<compile_context>
chip_gen: v7x
topology: tpu7x:2x2x1
jax: 0.10.0
libtpu: 0.0.40
codegen_flags: <defaults>
</compile_context>

<pallas_src>
import functools

import jax
import jax.numpy as jnp
from jax.experimental import pallas as pl
from jax.experimental.pallas import tpu as pltpu


def _round_up(x, m):
    return ((x + m - 1) // m) * m


def _patch_embed_kernel(p_ref, w_ref, b_ref, o_ref):
    # p_ref: (tm, K) bf16, w_ref: (K, tn) bf16, b_ref: (1, tn) f32,
    # o_ref: (tm, tn) f32.  f32 MXU accumulation; bias add rides the VPU.
    o_ref[...] = (
        jnp.dot(p_ref[...], w_ref[...], preferred_element_type=jnp.float32)
        + b_ref[...]
    )


@functools.partial(jax.jit, static_argnames=("patch_size",))
def patch_embed(x, weight, bias, patch_size):
    """ViT PatchEmbed forward.

    x: (B, C, H, W); weight: (E, C, ph, pw); bias: (E,).
    Returns (B, num_patches, E) float32, matching
    `self.proj(x).flatten(2).transpose(1, 2)` of the PyTorch module.
    """
    B, C, H, W = x.shape
    E = weight.shape[0]
    ph, pw = patch_size
    assert H % ph == 0 and W % pw == 0
    Hp, Wp = H // ph, W // pw
    num_patches = Hp * Wp

    # --- glue: non-overlapping patch extraction.
    # TODO(synk): this transpose is still an XLA-side HBM pass over x; we expose
    # it to input fusion (allow_input_fusion below) instead of DMA-ing raw
    # (C, ph, W) slabs and reordering in VMEM.
    patches = x.reshape(B, C, Hp, ph, Wp, pw)
    patches = patches.transpose(0, 2, 4, 1, 3, 5)             # (B, Hp, Wp, C, ph, pw)
    patches = patches.reshape(B * num_patches, C * ph * pw)   # (M, K)

    M, K = patches.shape
    N = E

    # bf16 MXU feeds; accumulation and bias stay f32 inside the kernel.
    patches = patches.astype(jnp.bfloat16)
    w2d = weight.reshape(E, K).T.astype(jnp.bfloat16)          # (K, N)
    b2d = bias.astype(jnp.float32).reshape(1, N)               # (1, N)

    # --- tiling: lane-dense N (multiple of 128), 16-aligned M, K untiled.
    N_pad = _round_up(N, 128)
    tn = 256 if N_pad % 256 == 0 else 128
    tm = 512 if M >= 512 else _round_up(M, 16)
    M_pad = _round_up(M, tm)

    if M_pad != M:
        patches = jnp.pad(patches, ((0, M_pad - M), (0, 0)))
    if N_pad != N:
        w2d = jnp.pad(w2d, ((0, 0), (0, N_pad - N)))
        b2d = jnp.pad(b2d, ((0, 0), (0, N_pad - N)))

    grid = (M_pad // tm, N_pad // tn)

    bytes_accessed = (
        M_pad * K * 2          # bf16 patches
        + K * N_pad * 2        # bf16 weight
        + N_pad * 4            # f32 bias
        + M_pad * N_pad * 4    # f32 output
    )
    cost = pl.CostEstimate(
        flops=2 * M_pad * K * N_pad,
        bytes_accessed=bytes_accessed,
        transcendentals=0,
    )

    out = pl.pallas_call(
        _patch_embed_kernel,
        out_shape=jax.ShapeDtypeStruct((M_pad, N_pad), jnp.float32),
        grid=grid,
        in_specs=[
            pl.BlockSpec((tm, K), lambda i, j: (i, 0)),
            pl.BlockSpec((K, tn), lambda i, j: (0, j)),
            pl.BlockSpec((1, tn), lambda i, j: (0, j)),
        ],
        out_specs=pl.BlockSpec((tm, tn), lambda i, j: (i, j)),
        compiler_params=pltpu.CompilerParams(
            dimension_semantics=("parallel", "parallel"),
            vmem_limit_bytes=48 * 1024 * 1024,
            allow_input_fusion=[True, False, False],
        ),
        cost_estimate=cost,
    )(patches, w2d, b2d)

    out = out[:M, :N]
    return out.reshape(B, num_patches, E)


if __name__ == "__main__":
    # Small shapes consistent with PatchEmbed: img 16x16, patch 8x8, 4 chans, 32 dim.
    B, C, H, W = 2, 4, 16, 16
    ph, pw = 8, 8
    E = 32

    key = jax.random.PRNGKey(0)
    kx, kw, kb = jax.random.split(key, 3)
    x = jax.random.normal(kx, (B, C, H, W), dtype=jnp.float32)
    weight = jax.random.normal(kw, (E, C, ph, pw), dtype=jnp.float32) * 0.02
    bias = jax.random.normal(kb, (E,), dtype=jnp.float32) * 0.02

    out = patch_embed(x, weight, bias, (ph, pw))
    out = jax.block_until_ready(out)

    # Reference: the actual strided conv, flattened like PyTorch's forward.
    ref = jax.lax.conv_general_dilated(
        x, weight, window_strides=(ph, pw), padding="VALID",
        dimension_numbers=("NCHW", "OIHW", "NCHW"),
    )
    ref = ref.reshape(B, E, -1).transpose(0, 2, 1) + bias.reshape(1, 1, E)

    assert out.shape == (B, (H // ph) * (W // pw), E), out.shape
    # bf16 inputs (f32 accumulate) -> loosened tolerance vs the f32 conv ref.
    assert jnp.allclose(out, ref, atol=2e-2, rtol=2e-2), "mismatch vs conv reference"
    print("KERNEL_OK")
</pallas_src>

<mosaic_0001>
module attributes {stable_mosaic.version = 11 : i64} {
  func.func @_patch_embed_kernel(%arg0: i32, %arg1: i32, %arg2: memref<16x256xbf16, #tpu.memory_space<vmem>>, %arg3: memref<256x128xbf16, #tpu.memory_space<vmem>>, %arg4: memref<1x128xf32, #tpu.memory_space<vmem>>, %arg5: memref<16x128xf32, #tpu.memory_space<vmem>>) attributes {dimension_semantics = [#tpu.dimension_semantics<parallel>, #tpu.dimension_semantics<parallel>], iteration_bounds = array<i64: 1, 1>, scalar_prefetch = 0 : i64, scratch_operands = 0 : i64, tpu.core_type = #tpu.core_type<tc>, window_params = [{transform_indices = @transform_0, window_bounds = array<i64: 16, 256>}, {transform_indices = @transform_1, window_bounds = array<i64: 256, 128>}, {transform_indices = @transform_2, window_bounds = array<i64: 1, 128>}, {transform_indices = @transform_3, window_bounds = array<i64: 16, 128>}]} {
    %c0 = arith.constant 0 : index
    %c0_0 = arith.constant 0 : index
    %0 = vector.load %arg2[%c0, %c0_0] : memref<16x256xbf16, #tpu.memory_space<vmem>>, vector<16x256xbf16>
    %c0_1 = arith.constant 0 : index
    %c0_2 = arith.constant 0 : index
    %1 = vector.load %arg3[%c0_1, %c0_2] : memref<256x128xbf16, #tpu.memory_space<vmem>>, vector<256x128xbf16>
    %cst = arith.constant dense<0.000000e+00> : vector<16x128xf32>
    %2 = tpu.matmul %0, %1, %cst {dimension_numbers = #tpu.dot_dimension_numbers<[1], [0], [0], [1], [0, 0, 1, 1], [], []>} : vector<16x256xbf16>, vector<256x128xbf16>, vector<16x128xf32> -> vector<16x128xf32>
    %c0_3 = arith.constant 0 : index
    %c0_4 = arith.constant 0 : index
    %3 = vector.load %arg4[%c0_3, %c0_4] : memref<1x128xf32, #tpu.memory_space<vmem>>, vector<1x128xf32>
    %4 = vector.broadcast %3 : vector<1x128xf32> to vector<16x128xf32>
    %5 = arith.addf %2, %4 : vector<16x128xf32>
    %c0_5 = arith.constant 0 : index
    %c0_6 = arith.constant 0 : index
    %6 = vector.load %arg5[%c0_5, %c0_6] : memref<16x128xf32, #tpu.memory_space<vmem>>, vector<16x128xf32>
    tpu.vector_store %arg5[%c0_5, %c0_6], %5 {strides = array<i32>} : memref<16x128xf32, #tpu.memory_space<vmem>>, vector<16x128xf32>,
    return
  }
  func.func @transform_0(%arg0: i32, %arg1: i32) -> (i32, i32) {
    %c0_i32 = arith.constant 0 : i32
    %c0_i32_0 = arith.constant 0 : i32
    return %arg0, %c0_i32 : i32, i32
  }
  func.func @transform_1(%arg0: i32, %arg1: i32) -> (i32, i32) {
    %c0_i32 = arith.constant 0 : i32
    %c0_i32_0 = arith.constant 0 : i32
    return %c0_i32, %arg1 : i32, i32
  }
  func.func @transform_2(%arg0: i32, %arg1: i32) -> (i32, i32) {
    %c0_i32 = arith.constant 0 : i32
    %c0_i32_0 = arith.constant 0 : i32
    return %c0_i32, %arg1 : i32, i32
  }
  func.func @transform_3(%arg0: i32, %arg1: i32) -> (i32, i32) {
    %c0_i32 = arith.constant 0 : i32
    return %arg0, %arg1 : i32, i32
  }
}

</mosaic_0001>

<bundles_post_ra>
// kernel: patch_embed.2
= control target key start
LH: loop header
LB: loop body
LE: loop exit
PB: predicated region body
PF: predicated region fallthrough
CT: control target
= control target key end

     0   :  { %s406_s0 = inlined_call_operand.vmem [shape: bf16[256,128], index: 0, kind: input, shape index: {}]   ;;  %s407_s1 = inlined_call_operand.vmem [shape: f32[1,128], index: 1, kind: input, shape index: {}]   ;;  %s408_s2 = inlined_call_operand.vmem [shape: bf16[8,256], index: 2, kind: input, shape index: {}]   ;;  %s409_s3 = inlined_call_operand.<no memory space> [shape: bf16[], index: 3, kind: input, shape index: {}]   ;;  %s410_s4 = inlined_call_operand.vmem [shape: f32[16,128], index: 4, kind: output, shape index: {}]  }
   0x1   :  { %v9_v0 = vstv %s409_s3 }
   0x2   :  { %v10_v1 = vunpack.i.l.bf16 %v9_v0 }
   0x3   :  { %v302_v2 = vld [vmem:[%s406_s0 + $0x40] sm:$0xff]   ;;  %v304_v5 = vld [vmem:[%s406_s0 + $0x48] sm:$0xff]   ;;  %v306_v7 = vld [vmem:[%s406_s0 + $0x50] sm:$0xff]  }
   0x4   :  { %v278_v3 = vpack.c.bf16 %v10_v1, %v10_v1  ;;  %v303_v4 = vld [vmem:[%s406_s0] sm:$0xff]   ;;  %280 = vmatprep.subr.bf16.mxu0 %v302_v2  ;;  %v305_v6 = vld [vmem:[%s406_s0 + $0x8] sm:$0xff]   ;;  %v307_v8 = vld [vmem:[%s406_s0 + $0x10] sm:$0xff]  }
   0x5   :  { %281 = vmatpush3.bf16.msra.mxu0 %v303_v4  ;;  %v308_v9 = vld [vmem:[%s406_s0 + $0x58] sm:$0xff]   ;;  %v310_v11 = vld [vmem:[%s406_s0 + $0x60] sm:$0xff]   ;;  %v312_v13 = vld [vmem:[%s406_s0 + $0x68] sm:$0xff]  }
   0x6   :  { %282 = vmatprep.subr.bf16.mxu0 %v304_v5  ;;  %v309_v10 = vld [vmem:[%s406_s0 + $0x18] sm:$0xff]   ;;  %v311_v12 = vld [vmem:[%s406_s0 + $0x20] sm:$0xff]   ;;  %v313_v15 = vld [vmem:[%s406_s0 + $0x28] sm:$0xff]  }
   0x7   :  { %v29_v14 = vld [vmem:[%s408_s2] sm:$0xff]   ;;  %v314_v16 = vld [vmem:[%s406_s0 + $0x70] sm:$0xff]   ;;  %v316_v18 = vld [vmem:[%s406_s0 + $0x78] sm:$0xff]  }
   0x8   :  { %34 = vst [vmem:[#allocation7] sm:$0xff] %v29_v14   ;;  %v315_v17 = vld [vmem:[%s406_s0 + $0x30] sm:$0xff]   ;;  %v317_v21 = vld [vmem:[%s406_s0 + $0x38] sm:$0xff]   ;;  %v256_v24 = vld [vmem:[%s407_s1] ss:$0 sm:$0xff] }
   0x9   :  { %283 = vmatpush3.bf16.msra.mxu0 %v305_v6 }
   0xa   :  { %284 = vmatprep.subr.bf16.mxu0 %v306_v7 }
   0xd   :  { %285 = vmatpush3.bf16.msra.mxu0 %v307_v8 }
   0xe   :  { %286 = vmatprep.subr.bf16.mxu0 %v308_v9 }
   0xf   :  { %v61_v19 = vld [vmem:[#allocation7] sm:$0xff] }
  0x10   :  { %v258_v20 = vcombine.high %v61_v19, %v278_v3  ;;  %v257_v22 = vcombine.low %v61_v19, %v278_v3 }
  0x11   :  { %287 = vmatpush3.bf16.msra.mxu0 %v309_v10 }
  0x12   :  { %288 = vmatprep.subr.bf16.mxu0 %v310_v11  ;;  %240 = vmatprep.mubr.bf16.mxu0 %v258_v20 }
  0x15   :  { %289 = vmatpush3.bf16.msra.mxu0 %v311_v12 }
  0x16   :  { %290 = vmatprep.subr.bf16.mxu0 %v312_v13 }
  0x19   :  { %291 = vmatpush3.bf16.msra.mxu0 %v313_v15 }
  0x1a   :  { %292 = vmatprep.subr.bf16.mxu0 %v314_v16 }
  0x1d   :  { %293 = vmatpush3.bf16.msra.mxu0 %v315_v17 }
  0x1e   :  { %294 = vmatprep.subr.bf16.mxu0 %v316_v18 }
  0x21   :  { %295 = vmatpush3.bf16.msra.mxu0 %v317_v21 }
  0x24   :  { %241 = vmatmul.mubr.bf16.vlgmr.msra.gmra.mrb[0].mxu0 %v257_v22 }
  0xf7   :  { %v296_v23 = vpop.f32.mrb[0].mxu0 }
  0xf8   :  { %v297_v25 = vpop.f32.mrb[1].mxu0 }
  0xf9   :  { %v298_v26 = vadd.f32 %v297_v25, %v296_v23  ;;  %v299_v27 = vpop.f32.mrb[2].mxu0 }
  0xfa   :  { %v300_v28 = vpop.f32.mrb[3].mxu0 }
  0xfb   :  { %v243_v29 = vadd.f32 %v298_v26, %v256_v24  ;;  %v301_v30 = vadd.f32 %v300_v28, %v299_v27 }
  0xfd   :  { %249 = vst [vmem:[%s410_s4] sm:$0xff] %v243_v29  ;;  %v246_v31 = vadd.f32 %v301_v30, %v256_v24 }
  0xff   :  { %250 = vst [vmem:[%s410_s4 + $0x8] sm:$0xff] %v246_v31 }

</bundles_post_ra>
